<compile_context>
chip_gen: v5e
topology: v5e:2x2
jax: 0.10.0
libtpu: 0.0.40
codegen_flags: <defaults>
</compile_context>

<pallas_src>
import functools

import jax
import jax.numpy as jnp
from jax.experimental import pallas as pl
from jax.experimental.pallas import tpu as pltpu

_N_BOX = 8  # channels 0..7 are the four (x, y) corner offsets


def _round_up(v, m):
    return (v + m - 1) // m * m


def _det_infer_kernel(off_ref, x_ref, o_ref, y_ref, *, stride):
    """Inference transform for one (TB, A, TS) tile.

    off_ref : (8, TS) f32            per-column grid offsets (even row -> grid_x=j,
                                     odd row -> grid_y=i, col = i*nG + j)
    x_ref   : (TB, A, TS)            raw conv activations, attrs-major
    o_ref   : (TB, TS, A)            output tile, attrs-minor (final layout)
    y_ref   : (TB, A_pad, TS_pad) f32 VMEM staging tile, (8,128)-aligned so the
                                     minor-dim transpose is maximally friendly
    """
    _, a, ts = x_ref.shape
    x = x_ref[...].astype(jnp.float32)
    off = off_ref[...]

    # Static, sublane-aligned slices into the staging tile (no concat temps,
    # sigmoid only on the objectness row).
    y_ref[:, :_N_BOX, :ts] = (x[:, :_N_BOX, :] + off[None]) * jnp.float32(stride)
    y_ref[:, _N_BOX:_N_BOX + 1, :ts] = jax.nn.sigmoid(x[:, _N_BOX:_N_BOX + 1, :])
    y_ref[:, _N_BOX + 1:a, :ts] = x[:, _N_BOX + 1:, :]

    # Single XLU transpose of the padded staging tile, then drop the pad
    # rows/cols and store attrs-minor. (Pad regions are never computed on.)
    yt = jnp.transpose(y_ref[...], (0, 2, 1))          # (TB, TS_pad, A_pad)
    o_ref[...] = yt[:, :ts, :a].astype(o_ref.dtype)


class DetectionLossPallas:
    """JAX/Pallas port of DetectionLoss (forward with targets=None)."""

    _MAX_BLOCK_BUDGET_BYTES = 6 << 20   # per-block VMEM budget cap (all buffers)
    _TARGET_STEPS = 4                   # >=2 per TC on v7x, >=3 for DMA overlap

    def __init__(self, anchors, nC, img_dim, anchor_idxs, out_dtype=jnp.float32):
        self.anchors = [(float(a_w), float(a_h)) for a_w, a_h in anchors]
        self.nA = len(self.anchors)
        self.nC = nC
        self.bbox_attrs = 9 + nC
        self.img_dim = img_dim
        self.out_dtype = out_dtype
        if anchor_idxs[0] == self.nA * 2:
            stride = 32
        elif anchor_idxs[0] == self.nA:
            stride = 16
        else:
            stride = 8
        self.init_stride = stride
        self.nG = int(self.img_dim / stride)
        self.scaled_anchors = jnp.array(
            [(a_w / stride, a_h / stride) for a_w, a_h in self.anchors],
            dtype=jnp.float32,
        )
        # Hoisted grid-offset table: offset[r, col] = col % nG (even r, grid_x)
        # or col // nG (odd r, grid_y); col = i*nG + j row-major.
        S = self.nG * self.nG
        col = jnp.arange(S, dtype=jnp.int32)
        gx = (col % self.nG).astype(jnp.float32)
        gy = (col // self.nG).astype(jnp.float32)
        row_even = (jnp.arange(_N_BOX) % 2 == 0)[:, None]
        self._offset = jnp.where(row_even, gx[None, :], gy[None, :])  # (8, S) f32

    @staticmethod
    def _vmem_capacity():
        try:
            cap = int(getattr(pltpu.get_tpu_info(), "vmem_capacity_bytes", 0))
            if cap > 0:
                return cap
        except Exception:
            pass
        return 64 << 20  # conservative fallback (v7x per-TC VMEM)

    def _plan(self, rows, A, S, in_itemsize, out_itemsize):
        """Pick (TB, TS, vmem_limit_bytes) from a generation-aware VMEM budget."""
        cap = self._vmem_capacity()
        budget = min(cap // 8, self._MAX_BLOCK_BUDGET_BYTES)

        a_in = _round_up(A, 8)       # sublane padding of the attrs-major tiles
        a_out = _round_up(A, 128)    # lane padding of the attrs-minor out tile

        def block_bytes(tb, ts):
            ts_in = _round_up(ts, 128)
            ts_out = _round_up(ts, 8)
            in_tile = tb * a_in * ts_in * in_itemsize
            out_tile = tb * ts_out * a_out * out_itemsize
            scratch = tb * a_in * ts_in * 4
            # double-buffered in/out + staging scratch + ~1 out-sized transpose temp
            return 2 * in_tile + 2 * out_tile + scratch + out_tile

        # Spatial (lane) tiling only when a single-row block exceeds the budget
        # (large nG); keep TS a multiple of 128 otherwise full-extent.
        ts = S
        while ts > 128 and block_bytes(1, ts) > budget:
            ts = max(128, _round_up(ts // 2, 128))

        per_row = block_bytes(1, ts)
        tb = max(1, min(rows, budget // max(1, per_row)))

        # Keep the DMA pipeline deep and let megacore shard the parallel axes.
        n_s = pl.cdiv(S, ts)
        needed_row_steps = max(1, -(-self._TARGET_STEPS // n_s))
        needed_row_steps = min(needed_row_steps, rows)
        tb = min(tb, max(1, rows // needed_row_steps))

        est = block_bytes(tb, ts) + 2 * _N_BOX * _round_up(ts, 128) * 4
        vmem_limit = int(min(cap, max(2 * est, 32 << 20)))
        return tb, ts, vmem_limit

    def __call__(self, p):
        # p: (bs, nA*bbox_attrs, nG, nG)   NCHW
        bs = p.shape[0]
        nG = p.shape[2]
        assert nG == self.nG, "grid size mismatch with init"
        stride = self.img_dim / nG
        A = self.bbox_attrs
        S = nG * nG
        rows = bs * self.nA

        # (bs, nA*A, nG, nG) -> (bs*nA, A, S): pure contiguous reshape, no cast
        # (the kernel upcasts to f32 internally, so bf16 input is fine).
        x = p.reshape(rows, A, S)

        in_isz = jnp.dtype(x.dtype).itemsize
        out_isz = jnp.dtype(self.out_dtype).itemsize
        tb, ts, vmem_limit = self._plan(rows, A, S, in_isz, out_isz)
        grid = (pl.cdiv(rows, tb), pl.cdiv(S, ts))

        kernel = functools.partial(_det_infer_kernel, stride=float(stride))

        out = pl.pallas_call(
            kernel,
            out_shape=jax.ShapeDtypeStruct((rows, S, A), self.out_dtype),
            grid_spec=pltpu.PrefetchScalarGridSpec(
                num_scalar_prefetch=0,
                grid=grid,
                in_specs=[
                    pl.BlockSpec((_N_BOX, ts), lambda i, j: (0, j)),   # offsets
                    pl.BlockSpec((tb, A, ts), lambda i, j: (i, 0, j)),  # activations
                ],
                out_specs=pl.BlockSpec((tb, ts, A), lambda i, j: (i, j, 0)),
                scratch_shapes=[
                    pltpu.VMEM((tb, _round_up(A, 8), _round_up(ts, 128)), jnp.float32)
                ],
            ),
            compiler_params=pltpu.CompilerParams(
                dimension_semantics=("parallel", "parallel"),
                vmem_limit_bytes=vmem_limit,
            ),
        )(self._offset, x)

        # (bs*nA, S, A) -> (bs, nA*nG*nG, 9+nC): free contiguous reshape, no
        # extra HBM permute pass.
        return out.reshape(bs, self.nA * S, A)


def _reference(p, module: DetectionLossPallas):
    """Pure-JAX replica of the PyTorch inference branch for verification."""
    bs, _, nG, _ = p.shape
    stride = module.img_dim / nG
    A = module.bbox_attrs
    pv = p.reshape(bs, module.nA, A, nG, nG).transpose(0, 1, 3, 4, 2)  # (bs,nA,nG,nG,A)
    gx = jnp.arange(nG, dtype=jnp.float32)[None, None, None, :]        # grid_x[i,j]=j
    gy = jnp.arange(nG, dtype=jnp.float32)[None, None, :, None]        # grid_y[i,j]=i
    boxes = []
    for c in range(8):
        g = gx if c % 2 == 0 else gy
        boxes.append(pv[..., c] + g)
    pred_boxes = jnp.stack(boxes, axis=-1)                             # (bs,nA,nG,nG,8)
    pred_conf = pv[..., 8]
    pred_cls = pv[..., 9:]
    return jnp.concatenate(
        [
            pred_boxes.reshape(bs, -1, 8) * stride,
            jax.nn.sigmoid(pred_conf.reshape(bs, -1, 1)),
            pred_cls.reshape(bs, -1, module.nC),
        ],
        axis=-1,
    )


def _run_case(key, anchors, nC, img_dim, anchor_idxs, bs):
    module = DetectionLossPallas(anchors, nC, img_dim, anchor_idxs)
    nA, A, nG = module.nA, module.bbox_attrs, module.nG
    p = jax.random.normal(key, (bs, nA * A, nG, nG), dtype=jnp.float32)
    out = jax.block_until_ready(module(p))
    ref = _reference(p, module)
    assert out.shape == (bs, nA * nG * nG, A), out.shape
    assert jnp.allclose(out, ref, atol=1e-5, rtol=1e-5), "mismatch vs reference"


if __name__ == "__main__":
    anchors = [(10.0, 13.0), (16.0, 30.0), (33.0, 23.0)]
    key = jax.random.PRNGKey(0)
    k1, k2 = jax.random.split(key)

    # Case 1: small class count (A=13): transpose fused in-kernel, no XLA permute.
    _run_case(k1, anchors, nC=4, img_dim=128, anchor_idxs=[0, 1, 2], bs=2)

    # Case 2: large class count (A=128): fully lane-dense output stores.
    _run_case(k2, anchors, nC=119, img_dim=128, anchor_idxs=[0, 1, 2], bs=2)

    print("KERNEL_OK")
</pallas_src>

<mosaic_0001>
module attributes {stable_mosaic.version = 11 : i64} {
  func.func @_det_infer_kernel(%arg0: i32, %arg1: i32, %arg2: memref<8x256xf32, #tpu.memory_space<vmem>>, %arg3: memref<1x13x256xf32, #tpu.memory_space<vmem>>, %arg4: memref<1x256x13xf32, #tpu.memory_space<vmem>>, %arg5: memref<1x16x256xf32, #tpu.memory_space<vmem>>) attributes {dimension_semantics = [#tpu.dimension_semantics<parallel>, #tpu.dimension_semantics<parallel>], iteration_bounds = array<i64: 6, 1>, scalar_prefetch = 0 : i64, scratch_operands = 1 : i64, tpu.core_type = #tpu.core_type<tc>, window_params = [{transform_indices = @transform_0, window_bounds = array<i64: 8, 256>}, {transform_indices = @transform_1, window_bounds = array<i64: 1, 13, 256>}, {transform_indices = @transform_2, window_bounds = array<i64: 1, 256, 13>}]} {
    %c0 = arith.constant 0 : index
    %c0_0 = arith.constant 0 : index
    %c0_1 = arith.constant 0 : index
    %0 = vector.load %arg3[%c0, %c0_0, %c0_1] : memref<1x13x256xf32, #tpu.memory_space<vmem>>, vector<1x13x256xf32>
    %c0_2 = arith.constant 0 : index
    %c0_3 = arith.constant 0 : index
    %1 = vector.load %arg2[%c0_2, %c0_3] : memref<8x256xf32, #tpu.memory_space<vmem>>, vector<8x256xf32>
    %2 = vector.extract_strided_slice %0 {offsets = [0, 0, 0], sizes = [1, 8, 256], strides = [1, 1, 1]} : vector<1x13x256xf32> to vector<1x8x256xf32>
    %3 = vector.shape_cast %1 : vector<8x256xf32> to vector<1x8x256xf32>
    %4 = arith.addf %2, %3 : vector<1x8x256xf32>
    %cst = arith.constant 8.000000e+00 : f32
    %5 = vector.broadcast %cst : f32 to vector<1x8x256xf32>
    %6 = arith.mulf %4, %5 : vector<1x8x256xf32>
    %c0_4 = arith.constant 0 : index
    %c0_5 = arith.constant 0 : index
    %c0_6 = arith.constant 0 : index
    %7 = vector.load %arg5[%c0_4, %c0_5, %c0_6] : memref<1x16x256xf32, #tpu.memory_space<vmem>>, vector<1x8x256xf32>
    tpu.vector_store %arg5[%c0_4, %c0_5, %c0_6], %6 {strides = array<i32>} : memref<1x16x256xf32, #tpu.memory_space<vmem>>, vector<1x8x256xf32>,
    %8 = vector.extract_strided_slice %0 {offsets = [0, 8, 0], sizes = [1, 1, 256], strides = [1, 1, 1]} : vector<1x13x256xf32> to vector<1x1x256xf32>
    %9 = arith.negf %8 : vector<1x1x256xf32>
    %10 = math.exp %9 : vector<1x1x256xf32>
    %cst_7 = arith.constant 1.000000e+00 : f32
    %11 = vector.broadcast %cst_7 : f32 to vector<1x1x256xf32>
    %12 = arith.addf %11, %10 : vector<1x1x256xf32>
    %13 = arith.divf %11, %12 : vector<1x1x256xf32>
    %c0_8 = arith.constant 0 : index
    %c8 = arith.constant 8 : index
    %c0_9 = arith.constant 0 : index
    %14 = vector.load %arg5[%c0_8, %c8, %c0_9] : memref<1x16x256xf32, #tpu.memory_space<vmem>>, vector<1x1x256xf32>
    tpu.vector_store %arg5[%c0_8, %c8, %c0_9], %13 {strides = array<i32>} : memref<1x16x256xf32, #tpu.memory_space<vmem>>, vector<1x1x256xf32>,
    %15 = vector.extract_strided_slice %0 {offsets = [0, 9, 0], sizes = [1, 4, 256], strides = [1, 1, 1]} : vector<1x13x256xf32> to vector<1x4x256xf32>
    %c0_10 = arith.constant 0 : index
    %c9 = arith.constant 9 : index
    %c0_11 = arith.constant 0 : index
    %16 = vector.load %arg5[%c0_10, %c9, %c0_11] : memref<1x16x256xf32, #tpu.memory_space<vmem>>, vector<1x4x256xf32>
    tpu.vector_store %arg5[%c0_10, %c9, %c0_11], %15 {strides = array<i32>} : memref<1x16x256xf32, #tpu.memory_space<vmem>>, vector<1x4x256xf32>,
    %c0_12 = arith.constant 0 : index
    %c0_13 = arith.constant 0 : index
    %c0_14 = arith.constant 0 : index
    %17 = vector.load %arg5[%c0_12, %c0_13, %c0_14] : memref<1x16x256xf32, #tpu.memory_space<vmem>>, vector<1x16x256xf32>
    %18 = tpu.transpose %17, [0, 2, 1] : vector<1x16x256xf32> -> vector<1x256x16xf32>
    %19 = vector.extract_strided_slice %18 {offsets = [0, 0, 0], sizes = [1, 256, 13], strides = [1, 1, 1]} : vector<1x256x16xf32> to vector<1x256x13xf32>
    %c0_15 = arith.constant 0 : index
    %c0_16 = arith.constant 0 : index
    %c0_17 = arith.constant 0 : index
    %20 = vector.load %arg4[%c0_15, %c0_16, %c0_17] : memref<1x256x13xf32, #tpu.memory_space<vmem>>, vector<1x256x13xf32>
    tpu.vector_store %arg4[%c0_15, %c0_16, %c0_17], %19 {strides = array<i32>} : memref<1x256x13xf32, #tpu.memory_space<vmem>>, vector<1x256x13xf32>,
    return
  }
  func.func @transform_0(%arg0: i32, %arg1: i32) -> (i32, i32) {
    %c0_i32 = arith.constant 0 : i32
    %c0_i32_0 = arith.constant 0 : i32
    return %c0_i32, %arg1 : i32, i32
  }
  func.func @transform_1(%arg0: i32, %arg1: i32) -> (i32, i32, i32) {
    %c0_i32 = arith.constant 0 : i32
    %c0_i32_0 = arith.constant 0 : i32
    return %arg0, %c0_i32, %arg1 : i32, i32, i32
  }
  func.func @transform_2(%arg0: i32, %arg1: i32) -> (i32, i32, i32) {
    %c0_i32 = arith.constant 0 : i32
    %c0_i32_0 = arith.constant 0 : i32
    return %arg0, %arg1, %c0_i32 : i32, i32, i32
  }
}

</mosaic_0001>

<bundles_post_ra>
// kernel: tpu_custom_call.1
= control target key start
LH: loop header
LB: loop body
LE: loop exit
PB: predicated region body
PF: predicated region fallthrough
CT: control target
= control target key end

     0   :  { %7 = vsyncpa [#allocation4], 0  ;;  %s908_s0 = inlined_call_operand.hbm [shape: f32[8,256], index: 0, kind: input, shape index: {}]   ;;  %s909_s1 = inlined_call_operand.hbm [shape: f32[6,13,256], index: 1, kind: input, shape index: {}]   ;;  %s910_s2 = inlined_call_operand.vmem [shape: f32[6,256,13], index: 2, kind: output, shape index: {}]  }
   0x1   :  { %8 = vsyncpa [#allocation6], 0 }
   0x2   :  { %10 = vsyncpa [#allocation6 + $0x1], 0  ;;  %s723_s9 = smov 0   ;;  %s725_s10 = smov 0  }
   0x3   :  { %s727_s11 = smov 0   ;;  %s729_s12 = smov 0  }
   0x4   :  { %s731_s13 = smov 0   ;;  %s733_s14 = smov 0  }
   0x5 LB: > { %s493_s15 = sadd.s32 4294967295, %s703_s14   ;;  %s63_s16 = sadd.s32 1, %s691_s11  ;;  %s703_s14 = sphi %s733_s14, %s16_s14   ;;  %s699_s13 = sphi %s731_s13, %s920_s13   ;;  %s695_s12 = sphi %s729_s12, %s919_s12   ;;  %s691_s11 = sphi %s727_s11, %s918_s11   ;;  %s687_s10 = sphi %s725_s10, %s917_s10   ;;  %s683_s9 = sphi %s723_s9, %s916_s9  }
   0x6   : > { %p70_p0 = scmp.ne.s32.totalorder %s691_s11, %s687_s10  ;;  %p71_p1 = scmp.eq.s32.totalorder %s703_s14, 0 }
   0x7   : > { %p76_p2 = scmp.ne.s32.totalorder %s687_s10, %s683_s9  ;;  %p757_p3 = scmp.eq.s32.totalorder %s493_s15, 0 }
   0x8   : > { %p761_p4 = por %p71_p1, %p70_p0  ;;  %p495_p5 = scmp.ge.s32.totalorder %s703_s14, 1 }
   0x9   : > { %p768_p6 = por %p757_p3, %p76_p2  ;;  %p115_p7 = scmp.lt.s32.totalorder %s703_s14, 7 }
   0xa   : > { %s130_s22 = sshll.u32 %s908_s0, 4  ;;  %s705_s24 = smov [#allocation3]   ;;  %s131_s22 = int_to_ptr.hbm [resolvable:$true] %s130_s22 }
   0xb   : > { %p776_p8 = pnand %p495_p5, %p115_p7  ;;  %s132_s25 = sshll.u32 %s705_s24, 4  ;;  %s133_s25 = int_to_ptr.vmem [resolvable:$true] %s132_s25 }
   0xc   : > { %p527_p10 = scmp.lt.s32.totalorder %s703_s14, 6  ;;  %s28_s27 = sadd.s32 1, %s699_s13 }
   0xd   : > { %p518_p9 = pneg %p776_p8  ;;  %p30_p13 = scmp.ge.s32.totalorder %s28_s27, 6 }
   0xe   : > { %p787_p12 = pnand %p527_p10, %p761_p4  ;;  %s143_s28 = sand.u32 1, %s691_s11  }
   0xf   : > { %p519_p11 = pnand %p518_p9, %p757_p3  ;;  %s510_s29 = sshll.u32 %s699_s13, 5 }
  0x10   : > { %s922_s27 = smov (%p30_p13, %s28_s27), 0  ;;  %s498_s30 = sshll.u32 %s143_s28, 5 }
  0x11   : > { %521 = dma.hbm_to_vmem [thread:$0]  (!%p519_p11), %s131_s22, 256, %s133_s25, [#allocation4]  }
  0x12   : > { %s58_s3 = ssub.s32 %s699_s13, %s922_s27  ;;  %s154_s6 = scalar_lea.hbm %s909_s1, %s510_s29 }
  0x13   : > { %p61_p0 = scmp.eq.s32.totalorder %s58_s3, 0  ;;  %s155_s7 = sshll.u32 %s154_s6, 4  ;;  %s156_s7 = int_to_ptr.hbm [resolvable:$true] %s155_s7 }
  0x14   : > { %s147_s8 = scalar_lea.vmem [#allocation5], %s498_s30  ;;  %s144_s18 = scalar_lea.sflag [#allocation6], %s143_s28 }
  0x15   : > { %s157_s9 = sshll.u32 %s147_s8, 4  ;;  %s706_s20 = smov 256   ;;  %s158_s9 = int_to_ptr.vmem [resolvable:$true] %s157_s9 }
  0x16   : > { %s804_s15 = scalar_select %p61_p0, %s691_s11, %s63_s16  }
  0x17   : > { %s707_s21 = smov 16   ;;  %169 = sbr.rel (%p776_p8) target bundleno = 355 (0x163), region = 28 }
  0x18   : > { %525 = dma.hbm_to_vmem [thread:$0]  (!%p787_p12), %s156_s7, 512, %s158_s9, %s144_s18, %s706_s20, %s706_s20, %s707_s21  }
  0x1c   : > { %674 = dma.done.wait (%p757_p3), [#allocation4], 256  }
  0x1d   : > { %676 = vsyncadd (%p757_p3), [#allocation4], 4294967040  ;;  %s176_s16 = sand.u32 1, %s687_s10  }
  0x1e   : > { %s503_s22 = sshll.u32 %s176_s16, 5  ;;  %s177_s24 = scalar_lea.sflag [#allocation6], %s176_s16 }
  0x1f   : > { %s180_s25 = scalar_lea.vmem [#allocation5], %s503_s22 }
  0x20   : > { %678 = dma.done.wait (%p768_p6), %s177_s24, 512  }
  0x21   : > { %680 = vsyncadd (%p768_p6), %s177_s24, 4294966784  ;;  %v219_v0 = vld [vmem:[%s180_s25 + $0x8] sm:$0xff]  ;;  %v223_v1 = vld [vmem:[#allocation3 + $0x8] sm:$0xff]  ;;  %v274_v32 = vlaneseq  ;;  %vm271_vm8 = vcmask 1040384   ;;  %p209_p1 = scmp.lt.s32.totalorder %s695_s12, 5  ;;  %vm351_vm10 = vcmask 105472  }
  0x22   : > { %v218_v2 = vld [vmem:[%s180_s25] sm:$0xff]  ;;  %v225_v3 = vadd.f32 %v223_v1, %v219_v0  ;;  %v222_v4 = vld [vmem:[#allocation3] sm:$0xff]  ;;  %v221_v6 = vld [vmem:[%s180_s25 + $0x18] sm:$0x1f] }
  0x23   : > { %v220_v5 = vld [vmem:[%s180_s25 + $0x10] sm:$0x1f]  ;;  %v224_v7 = vadd.f32 %v222_v4, %v218_v2  ;;  %v507_v9 = vmul.f32 -1.442695, %v221_v6  ;;  %282 = vst [vmem:[#allocation2 + $0x18] sm:$0x1e] %v221_v6 }
  0x24   : > { %v506_v8 = vmul.f32 -1.442695, %v220_v5  ;;  %v227_v10 = vmul.f32 8.0, %v225_v3  ;;  %281 = vst [vmem:[#allocation2 + $0x10] sm:$0x1e] %v220_v5  ;;  %vm276_vm9 = vcmp.lt.s32.totalorder %v274_v32, 256 }
  0x25   : > { %v226_v11 = vmul.f32 8.0, %v224_v7  ;;  %s924_s12 = smov (!%p209_p1, %s695_s12), 5 }
  0x26   : > { %581 = vpow2.f32 %v506_v8  ;;  %319 = vxpose.xlu1.b32.start [1/2] (short) %v227_v10, 128  ;;  %s511_s17 = sshll.u32 %s924_s12, 8 }
  0x27   : > { %583 = vpow2.f32 %v507_v9  ;;  %287 = vxpose.xlu0.b32.start [1/2] (short) %v226_v11, 128  ;;  %s824_s26 = scalar_lea.vmem %s910_s2, %s511_s17 }
  0x2c   : > { %v582_v12 = vpop.eup %581 }
  0x2d   : > { %v584_v13 = vpop.eup %583  ;;  %v236_v14 = vadd.f32 1.0, %v582_v12 }
  0x2e   : > { %v237_v15 = vadd.f32 1.0, %v584_v13 }
  0x2f   : > { %585 = vrcp.f32 %v236_v14  ;;  %vm243_vm0 = vweird.f32 %v236_v14  ;;  %v247_v19 = vand.u32 2147483647, %v236_v14  ;;  %v249_v22 = vand.u32 2147483648, %v236_v14 }
  0x30   : > { %587 = vrcp.f32 %v237_v15  ;;  %v264_v23 = vand.u32 2147483648, %v237_v15  ;;  %vm258_vm2 = vweird.f32 %v237_v15  ;;  %v262_v25 = vand.u32 2147483647, %v237_v15 }
  0x31   : > { %v250_v29 = vor.u32 1.1754944e-38, %v249_v22  ;;  %vm248_vm6 = vcmp.eq.f32.partialorder %v247_v19, 8.507059e+37 }
  0x32   : > { %v265_v30 = vor.u32 1.1754944e-38, %v264_v23  ;;  %vm263_vm7 = vcmp.eq.f32.partialorder %v262_v25, 8.507059e+37 }
  0x35   : > { %v586_v16 = vpop.eup %585 }
  0x36   : > { %v588_v17 = vpop.eup %587  ;;  %v239_v18 = vmul.f32 %v586_v16, %v236_v14  ;;  %vm244_vm1 = vweird.f32 %v586_v16 }
  0x37   : > { %v254_v20 = vmul.f32 %v588_v17, %v237_v15  ;;  %vm259_vm3 = vweird.f32 %v588_v17  ;;  %vm245_vm4 = vmor %vm243_vm0, %vm244_vm1 }
  0x38   : > { %v240_v21 = vsub.f32 1.0, %v239_v18  ;;  %vm260_vm5 = vmor %vm258_vm2, %vm259_vm3 }
  0x39   : > { %v255_v24 = vsub.f32 1.0, %v254_v20 }
  0x3a   : > { %v241_v26 = vmul.f32 %v586_v16, %v240_v21 }
  0x3b   : > { %v256_v27 = vmul.f32 %v588_v17, %v255_v24 }
  0x3c   : > { %v242_v28 = vadd.f32 %v586_v16, %v241_v26 }
  0x3d   : > { %v257_v31 = vadd.f32 %v588_v17, %v256_v27 }
  0x3e   : > { %v246_v33 = vsel %vm245_vm4, %v586_v16, %v242_v28 }
  0x3f   : > { %v261_v34 = vsel %vm260_vm5, %v588_v17, %v257_v31  ;;  %v251_v35 = vsel %vm248_vm6, %v250_v29, %v246_v33 }
  0x40   : > { %v266_v36 = vsel %vm263_vm7, %v265_v30, %v261_v34 }
  0x41   : > { %v270_v37 = vrot.slane %v266_v36, 7 }
  0x43   : > { %v272_v38 = vsel %vm271_vm8, %v251_v35, %v270_v37 }
  0x44   : > { %279 = vst.msk [vmem:[#allocation2 + $0x10] ss:$8 sm:$0x3] %vm276_vm9, %v272_v38 }
  0x4b   : > { %v286_v39 = vld [vmem:[#allocation2 + $0x18] sm:$0xff]  ;;  %v285_v40 = vld [vmem:[#allocation2 + $0x10] sm:$0xff] }
  0x4c   : > { %320 = vxpose.xlu1.b32.end [2/2] (short) %v286_v39, 128  ;;  %288 = vxpose.xlu0.b32.end [2/2] (short) %v285_v40, 128 }
  0xe8   : > { %v335_v41 = vpop.trf.xlu1  ;;  %v303_v42 = vpop.trf.xlu0 }
  0xe9   : > { %368 = vst.msk [vmem:[%s824_s26 + $0x80] sm:$0xff] %vm351_vm10, %v335_v41 }
  0xea   : > { %352 = vst.msk [vmem:[%s824_s26] sm:$0xff] %vm351_vm10, %v303_v42 }
  0xf0   : > { %v336_v43 = vpop.trf.xlu1  ;;  %v304_v44 = vpop.trf.xlu0 }
  0xf1   : > { %369 = vst.msk [vmem:[%s824_s26 + $0x88] sm:$0xff] %vm351_vm10, %v336_v43 }
  0xf2   : > { %353 = vst.msk [vmem:[%s824_s26 + $0x8] sm:$0xff] %vm351_vm10, %v304_v44 }
  0xf8   : > { %v337_v45 = vpop.trf.xlu1  ;;  %v305_v46 = vpop.trf.xlu0 }
  0xf9   : > { %370 = vst.msk [vmem:[%s824_s26 + $0x90] sm:$0xff] %vm351_vm10, %v337_v45 }
  0xfa   : > { %354 = vst.msk [vmem:[%s824_s26 + $0x10] sm:$0xff] %vm351_vm10, %v305_v46 }
 0x100   : > { %v338_v47 = vpop.trf.xlu1  ;;  %v306_v48 = vpop.trf.xlu0 }
 0x101   : > { %371 = vst.msk [vmem:[%s824_s26 + $0x98] sm:$0xff] %vm351_vm10, %v338_v47 }
 0x102   : > { %355 = vst.msk [vmem:[%s824_s26 + $0x18] sm:$0xff] %vm351_vm10, %v306_v48 }
 0x108   : > { %v339_v49 = vpop.trf.xlu1  ;;  %v307_v50 = vpop.trf.xlu0 }
 0x109   : > { %372 = vst.msk [vmem:[%s824_s26 + $0xa0] sm:$0xff] %vm351_vm10, %v339_v49 }
 0x10a   : > { %356 = vst.msk [vmem:[%s824_s26 + $0x20] sm:$0xff] %vm351_vm10, %v307_v50 }
 0x110   : > { %v340_v51 = vpop.trf.xlu1  ;;  %v308_v52 = vpop.trf.xlu0 }
 0x111   : > { %373 = vst.msk [vmem:[%s824_s26 + $0xa8] sm:$0xff] %vm351_vm10, %v340_v51 }
 0x112   : > { %357 = vst.msk [vmem:[%s824_s26 + $0x28] sm:$0xff] %vm351_vm10, %v308_v52 }
 0x118   : > { %v341_v53 = vpop.trf.xlu1  ;;  %v309_v54 = vpop.trf.xlu0 }
 0x119   : > { %374 = vst.msk [vmem:[%s824_s26 + $0xb0] sm:$0xff] %vm351_vm10, %v341_v53 }
 0x11a   : > { %358 = vst.msk [vmem:[%s824_s26 + $0x30] sm:$0xff] %vm351_vm10, %v309_v54 }
 0x120   : > { %v342_v55 = vpop.trf.xlu1  ;;  %v310_v56 = vpop.trf.xlu0 }
 0x121   : > { %375 = vst.msk [vmem:[%s824_s26 + $0xb8] sm:$0xff] %vm351_vm10, %v342_v55 }
 0x122   : > { %359 = vst.msk [vmem:[%s824_s26 + $0x38] sm:$0xff] %vm351_vm10, %v310_v56 }
 0x128   : > { %v343_v57 = vpop.trf.xlu1  ;;  %v311_v58 = vpop.trf.xlu0 }
 0x129   : > { %376 = vst.msk [vmem:[%s824_s26 + $0xc0] sm:$0xff] %vm351_vm10, %v343_v57 }
 0x12a   : > { %360 = vst.msk [vmem:[%s824_s26 + $0x40] sm:$0xff] %vm351_vm10, %v311_v58 }
 0x130   : > { %v344_v59 = vpop.trf.xlu1  ;;  %v312_v60 = vpop.trf.xlu0 }
 0x131   : > { %377 = vst.msk [vmem:[%s824_s26 + $0xc8] sm:$0xff] %vm351_vm10, %v344_v59 }
 0x132   : > { %361 = vst.msk [vmem:[%s824_s26 + $0x48] sm:$0xff] %vm351_vm10, %v312_v60 }
 0x138   : > { %v345_v61 = vpop.trf.xlu1  ;;  %v313_v62 = vpop.trf.xlu0 }
 0x139   : > { %378 = vst.msk [vmem:[%s824_s26 + $0xd0] sm:$0xff] %vm351_vm10, %v345_v61 }
 0x13a   : > { %362 = vst.msk [vmem:[%s824_s26 + $0x50] sm:$0xff] %vm351_vm10, %v313_v62 }
 0x140   : > { %v346_v63 = vpop.trf.xlu1  ;;  %v314_v0 = vpop.trf.xlu0 }
 0x141   : > { %379 = vst.msk [vmem:[%s824_s26 + $0xd8] sm:$0xff] %vm351_vm10, %v346_v63 }
 0x142   : > { %363 = vst.msk [vmem:[%s824_s26 + $0x58] sm:$0xff] %vm351_vm10, %v314_v0 }
 0x148   : > { %v347_v1 = vpop.trf.xlu1  ;;  %v315_v2 = vpop.trf.xlu0 }
 0x149   : > { %380 = vst.msk [vmem:[%s824_s26 + $0xe0] sm:$0xff] %vm351_vm10, %v347_v1 }
 0x14a   : > { %364 = vst.msk [vmem:[%s824_s26 + $0x60] sm:$0xff] %vm351_vm10, %v315_v2 }
 0x150   : > { %v348_v3 = vpop.trf.xlu1  ;;  %v316_v4 = vpop.trf.xlu0 }
 0x151   : > { %381 = vst.msk [vmem:[%s824_s26 + $0xe8] sm:$0xff] %vm351_vm10, %v348_v3 }
 0x152   : > { %365 = vst.msk [vmem:[%s824_s26 + $0x68] sm:$0xff] %vm351_vm10, %v316_v4 }
 0x158   : > { %v349_v5 = vpop.trf.xlu1  ;;  %v317_v6 = vpop.trf.xlu0 }
 0x159   : > { %382 = vst.msk [vmem:[%s824_s26 + $0xf0] sm:$0xff] %vm351_vm10, %v349_v5 }
 0x15a   : > { %366 = vst.msk [vmem:[%s824_s26 + $0x70] sm:$0xff] %vm351_vm10, %v317_v6 }
 0x160   : > { %v350_v7 = vpop.trf.xlu1  ;;  %v318_v8 = vpop.trf.xlu0 }
 0x161   : > { %383 = vst.msk [vmem:[%s824_s26 + $0xf8] sm:$0xff] %vm351_vm10, %v350_v7 }
 0x162   : > { %367 = vst.msk [vmem:[%s824_s26 + $0x78] sm:$0xff] %vm351_vm10, %v318_v8 }
 0x163 PF: > { %s16_s14 = sadd.s32 1, %s703_s14   ;;  %s916_s9 = smov %s687_s10 }
 0x164   : > { %p13_p2 = scmp.ge.s32.totalorder %s16_s14, 8   ;;  %s917_s10 = smov %s691_s11 }
 0x165   : > { %s918_s11 = smov %s804_s15  ;;  %s919_s12 = smov %s699_s13 }
 0x166   : > { %s920_s13 = smov %s922_s27  ;;  %15 = sbr.rel (!%p13_p2) target bundleno = 5 (0x5), region = 75 }
 0x16b   :  { %414 = vsyncpa [#allocation4], 1 }
 0x16c   :  { %416 = vsyncpa [#allocation4 + $0x1], 1 }
 0x16d   :  { %417 = vsyncpa [#allocation6], 1 }
 0x16e   :  { %419 = vsyncpa [#allocation6 + $0x1], 1 }

</bundles_post_ra>
